<compile_context>
chip_gen: v7x
topology: tpu7x:2x2x1
jax: 0.10.0
libtpu: 0.0.40
codegen_flags: <defaults>
</compile_context>

<pallas_src>
import functools

import jax
import jax.numpy as jnp
import numpy as np
from jax import lax
from jax.experimental import pallas as pl
from jax.experimental.pallas import tpu as pltpu


# -----------------------------------------------------------------------------
# Pallas kernel
# -----------------------------------------------------------------------------
def inception_kernel(L, K_max, mp_col,
                     x_ref, wb_ref, wfull_ref, gb_ref, lpos_ref, out_ref):
    """Fused InceptionModule forward pass.

    Layout: channels on sublanes, flattened batch*length (N = B*L) on lanes.

      x_ref     (Cp, N)             input (channels zero-padded to a sublane multiple)
      wb_ref    (F, Cp)             bottleneck 1x1 conv weight (no bias)
      wfull_ref (4F, mp_col + Cp)   fused block LHS:
                                      rows 0:3F,  cols t*F:(t+1)*F = tap-t conv weights
                                      rows 3F:4F, cols mp_col:     = maxpool 1x1 conv
      gb_ref    (4F, 2)             BatchNorm gamma (col 0) / beta (col 1)
      lpos_ref  (1, N)              position within each length-L segment (int32)
      out_ref   (4F, N)             lane-dense output
    """
    N = x_ref.shape[1]
    Cp = x_ref.shape[0]
    F = wb_ref.shape[0]
    pad = (K_max - 1) // 2
    eps = jnp.float32(1e-5)

    x = x_ref[...]

    # Hoisted sublane broadcasts of the segment position (used by every tap mask and
    # by the pooling edge masks) -- done exactly once.
    lpos = lpos_ref[...]                                   # (1, N) int32
    lpos_c = jnp.broadcast_to(lpos, (Cp, N))
    lpos_f = jnp.broadcast_to(lpos, (F, N))

    # Bottleneck 1x1 conv: (F, Cp) @ (Cp, N) -> (F, N).
    bott = jnp.dot(wb_ref[...], x, preferred_element_type=jnp.float32)

    # MaxPool1d(3, stride=1, padding=1) branch (edges padded with -inf via masks).
    left = jnp.where(lpos_c >= 1, pltpu.roll(x, 1, 1), -jnp.inf)           # x[:, n-1]
    right = jnp.where(lpos_c < L - 1, pltpu.roll(x, N - 1, 1), -jnp.inf)   # x[:, n+1]
    pooled = jnp.maximum(jnp.maximum(left, x), right)

    # Initialise the (4F, N) accumulator with the maxpool-branch 1x1 conv (only the
    # last F rows of this weight block are non-zero).
    acc = jnp.dot(wfull_ref[:, mp_col:mp_col + Cp], pooled,
                  preferred_element_type=jnp.float32)

    # Chunked im2col + accumulation: chunk*F = 128 rows per chunk keeps the weight
    # column slices lane-aligned and the tap blocks entirely in vregs.
    chunk = max(1, min(K_max, 128 // F))
    for c0 in range(0, K_max, chunk):                      # static loop
        nt = min(chunk, K_max - c0)
        blocks = []
        for t in range(c0, c0 + nt):
            s = t - pad                                    # shift along L in [-pad, pad]
            if s == 0:
                blk = bott
            elif s < 0:
                # blk[:, n] = bott[:, n + s] for l >= -s, else 0 (zero 'same' padding)
                blk = jnp.where(lpos_f >= -s, pltpu.roll(bott, -s, 1), 0.0)
            else:
                # blk[:, n] = bott[:, n + s] for l < L - s, else 0
                blk = jnp.where(lpos_f < L - s, pltpu.roll(bott, N - s, 1), 0.0)
            blocks.append(blk)
        u_chunk = jnp.concatenate(blocks, axis=0)          # (nt*F, N), stays in vregs
        acc += jnp.dot(wfull_ref[:, c0 * F:(c0 + nt) * F], u_chunk,
                       preferred_element_type=jnp.float32)

    # BatchNorm1d (training-mode batch stats, biased variance, two-pass) + ReLU.
    # Conv biases are intentionally omitted: a per-channel constant is cancelled by
    # the mean subtraction and does not affect the variance.
    mean = jnp.mean(acc, axis=1, keepdims=True)            # (4F, 1)
    d = acc - mean
    var = jnp.mean(d * d, axis=1, keepdims=True)
    scale = gb_ref[:, 0:1] * lax.rsqrt(var + eps)
    out_ref[...] = jnp.maximum(d * scale + gb_ref[:, 1:2], 0.0)


# -----------------------------------------------------------------------------
# Wrapper: NCL <-> (channels, B*L) glue, weight fusion, pallas_call
# -----------------------------------------------------------------------------
def inception_forward(x_ncl, params):
    """InceptionModule forward.  x_ncl: (B, Cin, L) torch NCL -> (B, 4F, L)."""
    B, Cin, L = x_ncl.shape
    F = params["wb"].shape[0]
    N = B * L                          # lane axis (multiple of 128 keeps stores lane-dense)
    Cp = -(-Cin // 8) * 8              # pad channels to a whole sublane tile

    ks = [int(w.shape[-1]) for w in params["w_convs"]]
    K_max = max(ks)
    mp_col = -(-(K_max * F) // 128) * 128   # lane-aligned column for the maxpool block

    # Activations: (B, Cin, L) -> (Cin, B*L), channels on sublanes, pad Cin -> Cp.
    x_cn = jnp.transpose(x_ncl, (1, 0, 2)).reshape(Cin, N).astype(jnp.float32)
    x_cn = jnp.pad(x_cn, ((0, Cp - Cin), (0, 0)))

    # Pointwise conv weights: torch (F, Cin, 1) -> (F, Cp) with zero-padded channels.
    wb = jnp.pad(params["wb"][:, :, 0].astype(jnp.float32), ((0, 0), (0, Cp - Cin)))
    wmp = jnp.pad(params["wmp"][:, :, 0].astype(jnp.float32), ((0, 0), (0, Cp - Cin)))

    # Fuse the three 'same' convs into one (3F, K_max*F) matrix; smaller kernels are
    # zero-padded into the centred K_max-tap window (all kernel sizes are odd).
    w_blocks = []
    for w in params["w_convs"]:                              # torch (F_out, F_in, K)
        K = int(w.shape[-1])
        off = (K_max - K) // 2
        wt = jnp.transpose(w, (0, 2, 1)).astype(jnp.float32)     # (F_out, K, F_in)
        wt = jnp.pad(wt, ((0, 0), (off, K_max - K - off), (0, 0)))
        w_blocks.append(wt.reshape(F, K_max * F))
    w_all = jnp.concatenate(w_blocks, axis=0)                # (3F, K_max*F)

    # Block LHS: tap columns [0, K_max*F) for the conv rows, maxpool 1x1 conv at a
    # lane-aligned column offset for the last F rows.  For v6e/v7x production, cast
    # this (and the activations fed to jnp.dot) to bf16.
    wfull = jnp.zeros((4 * F, mp_col + Cp), jnp.float32)
    wfull = wfull.at[:3 * F, :K_max * F].set(w_all)
    wfull = wfull.at[3 * F:, mp_col:].set(wmp)

    # BatchNorm affine params packed into one (4F, 2) array.
    gb = jnp.stack([params["gamma"].astype(jnp.float32),
                    params["beta"].astype(jnp.float32)], axis=1)

    # Position of every lane inside its length-L segment (for tap / pool edge masks).
    lpos = jnp.tile(jnp.arange(L, dtype=jnp.int32), B).reshape(1, N)

    vmem = pl.BlockSpec(memory_space=pltpu.MemorySpace.VMEM)
    kernel = functools.partial(inception_kernel, L, K_max, mp_col)
    out_cn = pl.pallas_call(
        kernel,
        out_shape=jax.ShapeDtypeStruct((4 * F, N), jnp.float32),
        in_specs=[vmem] * 5,
        out_specs=vmem,
    )(x_cn, wb, wfull, gb, lpos)

    # (4F, B*L) -> (B, 4F, L): torch concat order is preserved along the row axis.
    return jnp.transpose(out_cn.reshape(4 * F, B, L), (1, 0, 2))


# -----------------------------------------------------------------------------
# Pure-JAX reference (torch NCL layout) for correctness checking
# -----------------------------------------------------------------------------
def reference_forward(x, params):
    def conv1d(inp, w, pad):
        return lax.conv_general_dilated(inp, w, (1,), [(pad, pad)],
                                        dimension_numbers=("NCH", "OIH", "NCH"))

    bott = conv1d(x, params["wb"], 0)
    outs = []
    for w, b in zip(params["w_convs"], params["b_convs"]):
        K = w.shape[-1]
        outs.append(conv1d(bott, w, (K - 1) // 2) + b[None, :, None])
    pooled = lax.reduce_window(x, -jnp.inf, lax.max, (1, 1, 3), (1, 1, 1),
                               [(0, 0), (0, 0), (1, 1)])
    outs.append(conv1d(pooled, params["wmp"], 0))
    cat = jnp.concatenate(outs, axis=1)                         # (B, 4F, L)
    mean = jnp.mean(cat, axis=(0, 2), keepdims=True)
    var = jnp.mean((cat - mean) ** 2, axis=(0, 2), keepdims=True)
    g = params["gamma"][None, :, None]
    b = params["beta"][None, :, None]
    y = (cat - mean) * lax.rsqrt(var + 1e-5) * g + b
    return jnp.maximum(y, 0.0)


if __name__ == "__main__":
    # Module config (mirrors InceptionModule.__init__ with default kernel_size=40)
    B, C_in, L = 2, 4, 64
    num_filters = 8
    kernel_size = 40
    kernel_sizes = [max(kernel_size // 2 ** i, 3) for i in range(3)]
    kernel_sizes = [k - (k % 2 == 0) for k in kernel_sizes]      # [39, 19, 9]

    key = jax.random.PRNGKey(0)
    keys = jax.random.split(key, 11)

    params = {
        # torch-layout weights (O, I, K)
        "wb": 0.2 * jax.random.normal(keys[0], (num_filters, C_in, 1), jnp.float32),
        "w_convs": [0.1 * jax.random.normal(keys[1 + i], (num_filters, num_filters, k),
                                            jnp.float32)
                    for i, k in enumerate(kernel_sizes)],
        "b_convs": [0.1 * jax.random.normal(keys[4 + i], (num_filters,), jnp.float32)
                    for i in range(3)],
        "wmp": 0.2 * jax.random.normal(keys[7], (num_filters, C_in, 1), jnp.float32),
        "gamma": 1.0 + 0.1 * jax.random.normal(keys[8], (4 * num_filters,), jnp.float32),
        "beta": 0.05 * jax.random.normal(keys[9], (4 * num_filters,), jnp.float32),
    }
    x = jax.random.normal(keys[10], (B, C_in, L), jnp.float32)

    out_kernel = inception_forward(x, params)
    jax.block_until_ready(out_kernel)

    out_ref = reference_forward(x, params)
    np.testing.assert_allclose(np.asarray(out_kernel), np.asarray(out_ref),
                               rtol=1e-3, atol=1e-3)
    assert out_kernel.shape == (B, 4 * num_filters, L)
    print("KERNEL_OK")
</pallas_src>

<mosaic_0001>
module attributes {stable_mosaic.version = 11 : i64} {
  func.func @inception_kernel(%arg0: memref<8x128xf32, #tpu.memory_space<vmem>>, %arg1: memref<8x8xf32, #tpu.memory_space<vmem>>, %arg2: memref<32x392xf32, #tpu.memory_space<vmem>>, %arg3: memref<32x2xf32, #tpu.memory_space<vmem>>, %arg4: memref<1x128xi32, #tpu.memory_space<vmem>>, %arg5: memref<32x128xf32, #tpu.memory_space<vmem>>) attributes {dimension_semantics = [], scalar_prefetch = 0 : i64, scratch_operands = 0 : i64, tpu.core_type = #tpu.core_type<tc>} {
    %c0 = arith.constant 0 : index
    %c0_0 = arith.constant 0 : index
    %0 = vector.load %arg0[%c0, %c0_0] : memref<8x128xf32, #tpu.memory_space<vmem>>, vector<8x128xf32>
    %c0_1 = arith.constant 0 : index
    %c0_2 = arith.constant 0 : index
    %1 = vector.load %arg4[%c0_1, %c0_2] : memref<1x128xi32, #tpu.memory_space<vmem>>, vector<1x128xi32>
    %2 = vector.shape_cast %1 : vector<1x128xi32> to vector<1x128xi32>
    %3 = vector.broadcast %2 : vector<1x128xi32> to vector<8x128xi32>
    %4 = vector.shape_cast %1 : vector<1x128xi32> to vector<1x128xi32>
    %5 = vector.broadcast %4 : vector<1x128xi32> to vector<8x128xi32>
    %c0_3 = arith.constant 0 : index
    %c0_4 = arith.constant 0 : index
    %6 = vector.load %arg1[%c0_3, %c0_4] : memref<8x8xf32, #tpu.memory_space<vmem>>, vector<8x8xf32>
    %cst = arith.constant dense<0.000000e+00> : vector<8x128xf32>
    %7 = tpu.matmul %6, %0, %cst {dimension_numbers = #tpu.dot_dimension_numbers<[1], [0], [0], [1], [0, 0, 1, 1], [], []>} : vector<8x8xf32>, vector<8x128xf32>, vector<8x128xf32> -> vector<8x128xf32>
    %c1_i32 = arith.constant 1 : i32
    %8 = vector.broadcast %c1_i32 : i32 to vector<8x128xi32>
    %9 = arith.cmpi sge, %3, %8 : vector<8x128xi32>
    %c1_i32_5 = arith.constant 1 : i32
    %10 = tpu.dynamic_rotate %0 by %c1_i32_5 dim 1 : vector<8x128xf32>, i32 -> vector<8x128xf32>
    %cst_6 = arith.constant 0xFF800000 : f32
    %11 = vector.broadcast %cst_6 : f32 to vector<8x128xf32>
    %12 = arith.select %9, %10, %11 : vector<8x128xi1>, vector<8x128xf32>
    %c63_i32 = arith.constant 63 : i32
    %13 = vector.broadcast %c63_i32 : i32 to vector<8x128xi32>
    %14 = arith.cmpi slt, %3, %13 : vector<8x128xi32>
    %c127_i32 = arith.constant 127 : i32
    %15 = tpu.dynamic_rotate %0 by %c127_i32 dim 1 : vector<8x128xf32>, i32 -> vector<8x128xf32>
    %cst_7 = arith.constant 0xFF800000 : f32
    %16 = vector.broadcast %cst_7 : f32 to vector<8x128xf32>
    %17 = arith.select %14, %15, %16 : vector<8x128xi1>, vector<8x128xf32>
    %18 = arith.maximumf %12, %0 : vector<8x128xf32>
    %19 = arith.maximumf %18, %17 : vector<8x128xf32>
    %c0_8 = arith.constant 0 : index
    %c384 = arith.constant 384 : index
    %20 = vector.load %arg2[%c0_8, %c384] : memref<32x392xf32, #tpu.memory_space<vmem>>, vector<32x8xf32>
    %cst_9 = arith.constant dense<0.000000e+00> : vector<32x128xf32>
    %21 = tpu.matmul %20, %19, %cst_9 {dimension_numbers = #tpu.dot_dimension_numbers<[1], [0], [0], [1], [0, 0, 1, 1], [], []>} : vector<32x8xf32>, vector<8x128xf32>, vector<32x128xf32> -> vector<32x128xf32>
    %c19_i32 = arith.constant 19 : i32
    %22 = vector.broadcast %c19_i32 : i32 to vector<8x128xi32>
    %23 = arith.cmpi sge, %5, %22 : vector<8x128xi32>
    %c19_i32_10 = arith.constant 19 : i32
    %24 = tpu.dynamic_rotate %7 by %c19_i32_10 dim 1 : vector<8x128xf32>, i32 -> vector<8x128xf32>
    %cst_11 = arith.constant 0.000000e+00 : f32
    %25 = vector.broadcast %cst_11 : f32 to vector<8x128xf32>
    %26 = arith.select %23, %24, %25 : vector<8x128xi1>, vector<8x128xf32>
    %c18_i32 = arith.constant 18 : i32
    %27 = vector.broadcast %c18_i32 : i32 to vector<8x128xi32>
    %28 = arith.cmpi sge, %5, %27 : vector<8x128xi32>
    %c18_i32_12 = arith.constant 18 : i32
    %29 = tpu.dynamic_rotate %7 by %c18_i32_12 dim 1 : vector<8x128xf32>, i32 -> vector<8x128xf32>
    %cst_13 = arith.constant 0.000000e+00 : f32
    %30 = vector.broadcast %cst_13 : f32 to vector<8x128xf32>
    %31 = arith.select %28, %29, %30 : vector<8x128xi1>, vector<8x128xf32>
    %c17_i32 = arith.constant 17 : i32
    %32 = vector.broadcast %c17_i32 : i32 to vector<8x128xi32>
    %33 = arith.cmpi sge, %5, %32 : vector<8x128xi32>
    %c17_i32_14 = arith.constant 17 : i32
    %34 = tpu.dynamic_rotate %7 by %c17_i32_14 dim 1 : vector<8x128xf32>, i32 -> vector<8x128xf32>
    %cst_15 = arith.constant 0.000000e+00 : f32
    %35 = vector.broadcast %cst_15 : f32 to vector<8x128xf32>
    %36 = arith.select %33, %34, %35 : vector<8x128xi1>, vector<8x128xf32>
    %c16_i32 = arith.constant 16 : i32
    %37 = vector.broadcast %c16_i32 : i32 to vector<8x128xi32>
    %38 = arith.cmpi sge, %5, %37 : vector<8x128xi32>
    %c16_i32_16 = arith.constant 16 : i32
    %39 = tpu.dynamic_rotate %7 by %c16_i32_16 dim 1 : vector<8x128xf32>, i32 -> vector<8x128xf32>
    %cst_17 = arith.constant 0.000000e+00 : f32
    %40 = vector.broadcast %cst_17 : f32 to vector<8x128xf32>
    %41 = arith.select %38, %39, %40 : vector<8x128xi1>, vector<8x128xf32>
    %c15_i32 = arith.constant 15 : i32
    %42 = vector.broadcast %c15_i32 : i32 to vector<8x128xi32>
    %43 = arith.cmpi sge, %5, %42 : vector<8x128xi32>
    %c15_i32_18 = arith.constant 15 : i32
    %44 = tpu.dynamic_rotate %7 by %c15_i32_18 dim 1 : vector<8x128xf32>, i32 -> vector<8x128xf32>
    %cst_19 = arith.constant 0.000000e+00 : f32
    %45 = vector.broadcast %cst_19 : f32 to vector<8x128xf32>
    %46 = arith.select %43, %44, %45 : vector<8x128xi1>, vector<8x128xf32>
    %c14_i32 = arith.constant 14 : i32
    %47 = vector.broadcast %c14_i32 : i32 to vector<8x128xi32>
    %48 = arith.cmpi sge, %5, %47 : vector<8x128xi32>
    %c14_i32_20 = arith.constant 14 : i32
    %49 = tpu.dynamic_rotate %7 by %c14_i32_20 dim 1 : vector<8x128xf32>, i32 -> vector<8x128xf32>
    %cst_21 = arith.constant 0.000000e+00 : f32
    %50 = vector.broadcast %cst_21 : f32 to vector<8x128xf32>
    %51 = arith.select %48, %49, %50 : vector<8x128xi1>, vector<8x128xf32>
    %c13_i32 = arith.constant 13 : i32
    %52 = vector.broadcast %c13_i32 : i32 to vector<8x128xi32>
    %53 = arith.cmpi sge, %5, %52 : vector<8x128xi32>
    %c13_i32_22 = arith.constant 13 : i32
    %54 = tpu.dynamic_rotate %7 by %c13_i32_22 dim 1 : vector<8x128xf32>, i32 -> vector<8x128xf32>
    %cst_23 = arith.constant 0.000000e+00 : f32
    %55 = vector.broadcast %cst_23 : f32 to vector<8x128xf32>
    %56 = arith.select %53, %54, %55 : vector<8x128xi1>, vector<8x128xf32>
    %c12_i32 = arith.constant 12 : i32
    %57 = vector.broadcast %c12_i32 : i32 to vector<8x128xi32>
    %58 = arith.cmpi sge, %5, %57 : vector<8x128xi32>
    %c12_i32_24 = arith.constant 12 : i32
    %59 = tpu.dynamic_rotate %7 by %c12_i32_24 dim 1 : vector<8x128xf32>, i32 -> vector<8x128xf32>
    %cst_25 = arith.constant 0.000000e+00 : f32
    %60 = vector.broadcast %cst_25 : f32 to vector<8x128xf32>
    %61 = arith.select %58, %59, %60 : vector<8x128xi1>, vector<8x128xf32>
    %c11_i32 = arith.constant 11 : i32
    %62 = vector.broadcast %c11_i32 : i32 to vector<8x128xi32>
    %63 = arith.cmpi sge, %5, %62 : vector<8x128xi32>
    %c11_i32_26 = arith.constant 11 : i32
    %64 = tpu.dynamic_rotate %7 by %c11_i32_26 dim 1 : vector<8x128xf32>, i32 -> vector<8x128xf32>
    %cst_27 = arith.constant 0.000000e+00 : f32
    %65 = vector.broadcast %cst_27 : f32 to vector<8x128xf32>
    %66 = arith.select %63, %64, %65 : vector<8x128xi1>, vector<8x128xf32>
    %c10_i32 = arith.constant 10 : i32
    %67 = vector.broadcast %c10_i32 : i32 to vector<8x128xi32>
    %68 = arith.cmpi sge, %5, %67 : vector<8x128xi32>
    %c10_i32_28 = arith.constant 10 : i32
    %69 = tpu.dynamic_rotate %7 by %c10_i32_28 dim 1 : vector<8x128xf32>, i32 -> vector<8x128xf32>
    %cst_29 = arith.constant 0.000000e+00 : f32
    %70 = vector.broadcast %cst_29 : f32 to vector<8x128xf32>
    %71 = arith.select %68, %69, %70 : vector<8x128xi1>, vector<8x128xf32>
    %c9_i32 = arith.constant 9 : i32
    %72 = vector.broadcast %c9_i32 : i32 to vector<8x128xi32>
    %73 = arith.cmpi sge, %5, %72 : vector<8x128xi32>
    %c9_i32_30 = arith.constant 9 : i32
    %74 = tpu.dynamic_rotate %7 by %c9_i32_30 dim 1 : vector<8x128xf32>, i32 -> vector<8x128xf32>
    %cst_31 = arith.constant 0.000000e+00 : f32
    %75 = vector.broadcast %cst_31 : f32 to vector<8x128xf32>
    %76 = arith.select %73, %74, %75 : vector<8x128xi1>, vector<8x128xf32>
    %c8_i32 = arith.constant 8 : i32
    %77 = vector.broadcast %c8_i32 : i32 to vector<8x128xi32>
    %78 = arith.cmpi sge, %5, %77 : vector<8x128xi32>
    %c8_i32_32 = arith.constant 8 : i32
    %79 = tpu.dynamic_rotate %7 by %c8_i32_32 dim 1 : vector<8x128xf32>, i32 -> vector<8x128xf32>
    %cst_33 = arith.constant 0.000000e+00 : f32
    %80 = vector.broadcast %cst_33 : f32 to vector<8x128xf32>
    %81 = arith.select %78, %79, %80 : vector<8x128xi1>, vector<8x128xf32>
    %c7_i32 = arith.constant 7 : i32
    %82 = vector.broadcast %c7_i32 : i32 to vector<8x128xi32>
    %83 = arith.cmpi sge, %5, %82 : vector<8x128xi32>
    %c7_i32_34 = arith.constant 7 : i32
    %84 = tpu.dynamic_rotate %7 by %c7_i32_34 dim 1 : vector<8x128xf32>, i32 -> vector<8x128xf32>
    %cst_35 = arith.constant 0.000000e+00 : f32
    %85 = vector.broadcast %cst_35 : f32 to vector<8x128xf32>
    %86 = arith.select %83, %84, %85 : vector<8x128xi1>, vector<8x128xf32>
    %c6_i32 = arith.constant 6 : i32
    %87 = vector.broadcast %c6_i32 : i32 to vector<8x128xi32>
    %88 = arith.cmpi sge, %5, %87 : vector<8x128xi32>
    %c6_i32_36 = arith.constant 6 : i32
    %89 = tpu.dynamic_rotate %7 by %c6_i32_36 dim 1 : vector<8x128xf32>, i32 -> vector<8x128xf32>
    %cst_37 = arith.constant 0.000000e+00 : f32
    %90 = vector.broadcast %cst_37 : f32 to vector<8x128xf32>
    %91 = arith.select %88, %89, %90 : vector<8x128xi1>, vector<8x128xf32>
    %c5_i32 = arith.constant 5 : i32
    %92 = vector.broadcast %c5_i32 : i32 to vector<8x128xi32>
    %93 = arith.cmpi sge, %5, %92 : vector<8x128xi32>
    %c5_i32_38 = arith.constant 5 : i32
    %94 = tpu.dynamic_rotate %7 by %c5_i32_38 dim 1 : vector<8x128xf32>, i32 -> vector<8x128xf32>
    %cst_39 = arith.constant 0.000000e+00 : f32
    %95 = vector.broadcast %cst_39 : f32 to vector<8x128xf32>
    %96 = arith.select %93, %94, %95 : vector<8x128xi1>, vector<8x128xf32>
    %c4_i32 = arith.constant 4 : i32
    %97 = vector.broadcast %c4_i32 : i32 to vector<8x128xi32>
    %98 = arith.cmpi sge, %5, %97 : vector<8x128xi32>
    %c4_i32_40 = arith.constant 4 : i32
    %99 = tpu.dynamic_rotate %7 by %c4_i32_40 dim 1 : vector<8x128xf32>, i32 -> vector<8x128xf32>
    %cst_41 = arith.constant 0.000000e+00 : f32
    %100 = vector.broadcast %cst_41 : f32 to vector<8x128xf32>
    %101 = arith.select %98, %99, %100 : vector<8x128xi1>, vector<8x128xf32>
    %102 = tpu.concatenate %26, %31, %36, %41, %46, %51, %56, %61, %66, %71, %76, %81, %86, %91, %96, %101 in 0 : vector<8x128xf32>, vector<8x128xf32>, vector<8x128xf32>, vector<8x128xf32>, vector<8x128xf32>, vector<8x128xf32>, vector<8x128xf32>, vector<8x128xf32>, vector<8x128xf32>, vector<8x128xf32>, vector<8x128xf32>, vector<8x128xf32>, vector<8x128xf32>, vector<8x128xf32>, vector<8x128xf32>, vector<8x128xf32> -> vector<128x128xf32>
    %c0_42 = arith.constant 0 : index
    %c0_43 = arith.constant 0 : index
    %103 = vector.load %arg2[%c0_42, %c0_43] : memref<32x392xf32, #tpu.memory_space<vmem>>, vector<32x128xf32>
    %cst_44 = arith.constant dense<0.000000e+00> : vector<32x128xf32>
    %104 = tpu.matmul %103, %102, %cst_44 {dimension_numbers = #tpu.dot_dimension_numbers<[1], [0], [0], [1], [0, 0, 1, 1], [], []>} : vector<32x128xf32>, vector<128x128xf32>, vector<32x128xf32> -> vector<32x128xf32>
    %105 = arith.addf %21, %104 : vector<32x128xf32>
    %c3_i32 = arith.constant 3 : i32
    %106 = vector.broadcast %c3_i32 : i32 to vector<8x128xi32>
    %107 = arith.cmpi sge, %5, %106 : vector<8x128xi32>
    %c3_i32_45 = arith.constant 3 : i32
    %108 = tpu.dynamic_rotate %7 by %c3_i32_45 dim 1 : vector<8x128xf32>, i32 -> vector<8x128xf32>
    %cst_46 = arith.constant 0.000000e+00 : f32
    %109 = vector.broadcast %cst_46 : f32 to vector<8x128xf32>
    %110 = arith.select %107, %108, %109 : vector<8x128xi1>, vector<8x128xf32>
    %c2_i32 = arith.constant 2 : i32
    %111 = vector.broadcast %c2_i32 : i32 to vector<8x128xi32>
    %112 = arith.cmpi sge, %5, %111 : vector<8x128xi32>
    %c2_i32_47 = arith.constant 2 : i32
    %113 = tpu.dynamic_rotate %7 by %c2_i32_47 dim 1 : vector<8x128xf32>, i32 -> vector<8x128xf32>
    %cst_48 = arith.constant 0.000000e+00 : f32
    %114 = vector.broadcast %cst_48 : f32 to vector<8x128xf32>
    %115 = arith.select %112, %113, %114 : vector<8x128xi1>, vector<8x128xf32>
    %c1_i32_49 = arith.constant 1 : i32
    %116 = vector.broadcast %c1_i32_49 : i32 to vector<8x128xi32>
    %117 = arith.cmpi sge, %5, %116 : vector<8x128xi32>
    %c1_i32_50 = arith.constant 1 : i32
    %118 = tpu.dynamic_rotate %7 by %c1_i32_50 dim 1 : vector<8x128xf32>, i32 -> vector<8x128xf32>
    %cst_51 = arith.constant 0.000000e+00 : f32
    %119 = vector.broadcast %cst_51 : f32 to vector<8x128xf32>
    %120 = arith.select %117, %118, %119 : vector<8x128xi1>, vector<8x128xf32>
    %c63_i32_52 = arith.constant 63 : i32
    %121 = vector.broadcast %c63_i32_52 : i32 to vector<8x128xi32>
    %122 = arith.cmpi slt, %5, %121 : vector<8x128xi32>
    %c127_i32_53 = arith.constant 127 : i32
    %123 = tpu.dynamic_rotate %7 by %c127_i32_53 dim 1 : vector<8x128xf32>, i32 -> vector<8x128xf32>
    %cst_54 = arith.constant 0.000000e+00 : f32
    %124 = vector.broadcast %cst_54 : f32 to vector<8x128xf32>
    %125 = arith.select %122, %123, %124 : vector<8x128xi1>, vector<8x128xf32>
    %c62_i32 = arith.constant 62 : i32
    %126 = vector.broadcast %c62_i32 : i32 to vector<8x128xi32>
    %127 = arith.cmpi slt, %5, %126 : vector<8x128xi32>
    %c126_i32 = arith.constant 126 : i32
    %128 = tpu.dynamic_rotate %7 by %c126_i32 dim 1 : vector<8x128xf32>, i32 -> vector<8x128xf32>
    %cst_55 = arith.constant 0.000000e+00 : f32
    %129 = vector.broadcast %cst_55 : f32 to vector<8x128xf32>
    %130 = arith.select %127, %128, %129 : vector<8x128xi1>, vector<8x128xf32>
    %c61_i32 = arith.constant 61 : i32
    %131 = vector.broadcast %c61_i32 : i32 to vector<8x128xi32>
    %132 = arith.cmpi slt, %5, %131 : vector<8x128xi32>
    %c125_i32 = arith.constant 125 : i32
    %133 = tpu.dynamic_rotate %7 by %c125_i32 dim 1 : vector<8x128xf32>, i32 -> vector<8x128xf32>
    %cst_56 = arith.constant 0.000000e+00 : f32
    %134 = vector.broadcast %cst_56 : f32 to vector<8x128xf32>
    %135 = arith.select %132, %133, %134 : vector<8x128xi1>, vector<8x128xf32>
    %c60_i32 = arith.constant 60 : i32
    %136 = vector.broadcast %c60_i32 : i32 to vector<8x128xi32>
    %137 = arith.cmpi slt, %5, %136 : vector<8x128xi32>
    %c124_i32 = arith.constant 124 : i32
    %138 = tpu.dynamic_rotate %7 by %c124_i32 dim 1 : vector<8x128xf32>, i32 -> vector<8x128xf32>
    %cst_57 = arith.constant 0.000000e+00 : f32
    %139 = vector.broadcast %cst_57 : f32 to vector<8x128xf32>
    %140 = arith.select %137, %138, %139 : vector<8x128xi1>, vector<8x128xf32>
    %c59_i32 = arith.constant 59 : i32
    %141 = vector.broadcast %c59_i32 : i32 to vector<8x128xi32>
    %142 = arith.cmpi slt, %5, %141 : vector<8x128xi32>
    %c123_i32 = arith.constant 123 : i32
    %143 = tpu.dynamic_rotate %7 by %c123_i32 dim 1 : vector<8x128xf32>, i32 -> vector<8x128xf32>
    %cst_58 = arith.constant 0.000000e+00 : f32
    %144 = vector.broadcast %cst_58 : f32 to vector<8x128xf32>
    %145 = arith.select %142, %143, %144 : vector<8x128xi1>, vector<8x128xf32>
    %c58_i32 = arith.constant 58 : i32
    %146 = vector.broadcast %c58_i32 : i32 to vector<8x128xi32>
    %147 = arith.cmpi slt, %5, %146 : vector<8x128xi32>
    %c122_i32 = arith.constant 122 : i32
    %148 = tpu.dynamic_rotate %7 by %c122_i32 dim 1 : vector<8x128xf32>, i32 -> vector<8x128xf32>
    %cst_59 = arith.constant 0.000000e+00 : f32
    %149 = vector.broadcast %cst_59 : f32 to vector<8x128xf32>
    %150 = arith.select %147, %148, %149 : vector<8x128xi1>, vector<8x128xf32>
    %c57_i32 = arith.constant 57 : i32
    %151 = vector.broadcast %c57_i32 : i32 to vector<8x128xi32>
    %152 = arith.cmpi slt, %5, %151 : vector<8x128xi32>
    %c121_i32 = arith.constant 121 : i32
    %153 = tpu.dynamic_rotate %7 by %c121_i32 dim 1 : vector<8x128xf32>, i32 -> vector<8x128xf32>
    %cst_60 = arith.constant 0.000000e+00 : f32
    %154 = vector.broadcast %cst_60 : f32 to vector<8x128xf32>
    %155 = arith.select %152, %153, %154 : vector<8x128xi1>, vector<8x128xf32>
    %c56_i32 = arith.constant 56 : i32
    %156 = vector.broadcast %c56_i32 : i32 to vector<8x128xi32>
    %157 = arith.cmpi slt, %5, %156 : vector<8x128xi32>
    %c120_i32 = arith.constant 120 : i32
    %158 = tpu.dynamic_rotate %7 by %c120_i32 dim 1 : vector<8x128xf32>, i32 -> vector<8x128xf32>
    %cst_61 = arith.constant 0.000000e+00 : f32
    %159 = vector.broadcast %cst_61 : f32 to vector<8x128xf32>
    %160 = arith.select %157, %158, %159 : vector<8x128xi1>, vector<8x128xf32>
    %c55_i32 = arith.constant 55 : i32
    %161 = vector.broadcast %c55_i32 : i32 to vector<8x128xi32>
    %162 = arith.cmpi slt, %5, %161 : vector<8x128xi32>
    %c119_i32 = arith.constant 119 : i32
    %163 = tpu.dynamic_rotate %7 by %c119_i32 dim 1 : vector<8x128xf32>, i32 -> vector<8x128xf32>
    %cst_62 = arith.constant 0.000000e+00 : f32
    %164 = vector.broadcast %cst_62 : f32 to vector<8x128xf32>
    %165 = arith.select %162, %163, %164 : vector<8x128xi1>, vector<8x128xf32>
    %c54_i32 = arith.constant 54 : i32
    %166 = vector.broadcast %c54_i32 : i32 to vector<8x128xi32>
    %167 = arith.cmpi slt, %5, %166 : vector<8x128xi32>
    %c118_i32 = arith.constant 118 : i32
    %168 = tpu.dynamic_rotate %7 by %c118_i32 dim 1 : vector<8x128xf32>, i32 -> vector<8x128xf32>
    %cst_63 = arith.constant 0.000000e+00 : f32
    %169 = vector.broadcast %cst_63 : f32 to vector<8x128xf32>
    %170 = arith.select %167, %168, %169 : vector<8x128xi1>, vector<8x128xf32>
    %c53_i32 = arith.constant 53 : i32
    %171 = vector.broadcast %c53_i32 : i32 to vector<8x128xi32>
    %172 = arith.cmpi slt, %5, %171 : vector<8x128xi32>
    %c117_i32 = arith.constant 117 : i32
    %173 = tpu.dynamic_rotate %7 by %c117_i32 dim 1 : vector<8x128xf32>, i32 -> vector<8x128xf32>
    %cst_64 = arith.constant 0.000000e+00 : f32
    %174 = vector.broadcast %cst_64 : f32 to vector<8x128xf32>
    %175 = arith.select %172, %173, %174 : vector<8x128xi1>, vector<8x128xf32>
    %c52_i32 = arith.constant 52 : i32
    %176 = vector.broadcast %c52_i32 : i32 to vector<8x128xi32>
    %177 = arith.cmpi slt, %5, %176 : vector<8x128xi32>
    %c116_i32 = arith.constant 116 : i32
    %178 = tpu.dynamic_rotate %7 by %c116_i32 dim 1 : vector<8x128xf32>, i32 -> vector<8x128xf32>
    %cst_65 = arith.constant 0.000000e+00 : f32
    %179 = vector.broadcast %cst_65 : f32 to vector<8x128xf32>
    %180 = arith.select %177, %178, %179 : vector<8x128xi1>, vector<8x128xf32>
    %181 = tpu.concatenate %110, %115, %120, %7, %125, %130, %135, %140, %145, %150, %155, %160, %165, %170, %175, %180 in 0 : vector<8x128xf32>, vector<8x128xf32>, vector<8x128xf32>, vector<8x128xf32>, vector<8x128xf32>, vector<8x128xf32>, vector<8x128xf32>, vector<8x128xf32>, vector<8x128xf32>, vector<8x128xf32>, vector<8x128xf32>, vector<8x128xf32>, vector<8x128xf32>, vector<8x128xf32>, vector<8x128xf32>, vector<8x128xf32> -> vector<128x128xf32>
    %c0_66 = arith.constant 0 : index
    %c128 = arith.constant 128 : index
    %182 = vector.load %arg2[%c0_66, %c128] : memref<32x392xf32, #tpu.memory_space<vmem>>, vector<32x128xf32>
    %cst_67 = arith.constant dense<0.000000e+00> : vector<32x128xf32>
    %183 = tpu.matmul %182, %181, %cst_67 {dimension_numbers = #tpu.dot_dimension_numbers<[1], [0], [0], [1], [0, 0, 1, 1], [], []>} : vector<32x128xf32>, vector<128x128xf32>, vector<32x128xf32> -> vector<32x128xf32>
    %184 = arith.addf %105, %183 : vector<32x128xf32>
    %c51_i32 = arith.constant 51 : i32
    %185 = vector.broadcast %c51_i32 : i32 to vector<8x128xi32>
    %186 = arith.cmpi slt, %5, %185 : vector<8x128xi32>
    %c115_i32 = arith.constant 115 : i32
    %187 = tpu.dynamic_rotate %7 by %c115_i32 dim 1 : vector<8x128xf32>, i32 -> vector<8x128xf32>
    %cst_68 = arith.constant 0.000000e+00 : f32
    %188 = vector.broadcast %cst_68 : f32 to vector<8x128xf32>
    %189 = arith.select %186, %187, %188 : vector<8x128xi1>, vector<8x128xf32>
    %c50_i32 = arith.constant 50 : i32
    %190 = vector.broadcast %c50_i32 : i32 to vector<8x128xi32>
    %191 = arith.cmpi slt, %5, %190 : vector<8x128xi32>
    %c114_i32 = arith.constant 114 : i32
    %192 = tpu.dynamic_rotate %7 by %c114_i32 dim 1 : vector<8x128xf32>, i32 -> vector<8x128xf32>
    %cst_69 = arith.constant 0.000000e+00 : f32
    %193 = vector.broadcast %cst_69 : f32 to vector<8x128xf32>
    %194 = arith.select %191, %192, %193 : vector<8x128xi1>, vector<8x128xf32>
    %c49_i32 = arith.constant 49 : i32
    %195 = vector.broadcast %c49_i32 : i32 to vector<8x128xi32>
    %196 = arith.cmpi slt, %5, %195 : vector<8x128xi32>
    %c113_i32 = arith.constant 113 : i32
    %197 = tpu.dynamic_rotate %7 by %c113_i32 dim 1 : vector<8x128xf32>, i32 -> vector<8x128xf32>
    %cst_70 = arith.constant 0.000000e+00 : f32
    %198 = vector.broadcast %cst_70 : f32 to vector<8x128xf32>
    %199 = arith.select %196, %197, %198 : vector<8x128xi1>, vector<8x128xf32>
    %c48_i32 = arith.constant 48 : i32
    %200 = vector.broadcast %c48_i32 : i32 to vector<8x128xi32>
    %201 = arith.cmpi slt, %5, %200 : vector<8x128xi32>
    %c112_i32 = arith.constant 112 : i32
    %202 = tpu.dynamic_rotate %7 by %c112_i32 dim 1 : vector<8x128xf32>, i32 -> vector<8x128xf32>
    %cst_71 = arith.constant 0.000000e+00 : f32
    %203 = vector.broadcast %cst_71 : f32 to vector<8x128xf32>
    %204 = arith.select %201, %202, %203 : vector<8x128xi1>, vector<8x128xf32>
    %c47_i32 = arith.constant 47 : i32
    %205 = vector.broadcast %c47_i32 : i32 to vector<8x128xi32>
    %206 = arith.cmpi slt, %5, %205 : vector<8x128xi32>
    %c111_i32 = arith.constant 111 : i32
    %207 = tpu.dynamic_rotate %7 by %c111_i32 dim 1 : vector<8x128xf32>, i32 -> vector<8x128xf32>
    %cst_72 = arith.constant 0.000000e+00 : f32
    %208 = vector.broadcast %cst_72 : f32 to vector<8x128xf32>
    %209 = arith.select %206, %207, %208 : vector<8x128xi1>, vector<8x128xf32>
    %c46_i32 = arith.constant 46 : i32
    %210 = vector.broadcast %c46_i32 : i32 to vector<8x128xi32>
    %211 = arith.cmpi slt, %5, %210 : vector<8x128xi32>
    %c110_i32 = arith.constant 110 : i32
    %212 = tpu.dynamic_rotate %7 by %c110_i32 dim 1 : vector<8x128xf32>, i32 -> vector<8x128xf32>
    %cst_73 = arith.constant 0.000000e+00 : f32
    %213 = vector.broadcast %cst_73 : f32 to vector<8x128xf32>
    %214 = arith.select %211, %212, %213 : vector<8x128xi1>, vector<8x128xf32>
    %c45_i32 = arith.constant 45 : i32
    %215 = vector.broadcast %c45_i32 : i32 to vector<8x128xi32>
    %216 = arith.cmpi slt, %5, %215 : vector<8x128xi32>
    %c109_i32 = arith.constant 109 : i32
    %217 = tpu.dynamic_rotate %7 by %c109_i32 dim 1 : vector<8x128xf32>, i32 -> vector<8x128xf32>
    %cst_74 = arith.constant 0.000000e+00 : f32
    %218 = vector.broadcast %cst_74 : f32 to vector<8x128xf32>
    %219 = arith.select %216, %217, %218 : vector<8x128xi1>, vector<8x128xf32>
    %220 = tpu.concatenate %189, %194, %199, %204, %209, %214, %219 in 0 : vector<8x128xf32>, vector<8x128xf32>, vector<8x128xf32>, vector<8x128xf32>, vector<8x128xf32>, vector<8x128xf32>, vector<8x128xf32> -> vector<56x128xf32>
    %c0_75 = arith.constant 0 : index
    %c256 = arith.constant 256 : index
    %221 = vector.load %arg2[%c0_75, %c256] : memref<32x392xf32, #tpu.memory_space<vmem>>, vector<32x56xf32>
    %cst_76 = arith.constant dense<0.000000e+00> : vector<32x128xf32>
    %222 = tpu.matmul %221, %220, %cst_76 {dimension_numbers = #tpu.dot_dimension_numbers<[1], [0], [0], [1], [0, 0, 1, 1], [], []>} : vector<32x56xf32>, vector<56x128xf32>, vector<32x128xf32> -> vector<32x128xf32>
    %223 = arith.addf %184, %222 : vector<32x128xf32>
    %cst_77 = arith.constant dense<0.000000e+00> : vector<32xf32>
    %224 = vector.multi_reduction <add>, %223, %cst_77 [1] : vector<32x128xf32> to vector<32xf32>
    %225 = vector.shape_cast %224 : vector<32xf32> to vector<32x1xf32>
    %cst_78 = arith.constant 1.280000e+02 : f32
    %226 = vector.broadcast %cst_78 : f32 to vector<32x1xf32>
    %227 = arith.divf %225, %226 : vector<32x1xf32>
    %228 = vector.broadcast %227 : vector<32x1xf32> to vector<32x128xf32>
    %229 = arith.subf %223, %228 : vector<32x128xf32>
    %230 = arith.mulf %229, %229 : vector<32x128xf32>
    %cst_79 = arith.constant dense<0.000000e+00> : vector<32xf32>
    %231 = vector.multi_reduction <add>, %230, %cst_79 [1] : vector<32x128xf32> to vector<32xf32>
    %232 = vector.shape_cast %231 : vector<32xf32> to vector<32x1xf32>
    %cst_80 = arith.constant 1.280000e+02 : f32
    %233 = vector.broadcast %cst_80 : f32 to vector<32x1xf32>
    %234 = arith.divf %232, %233 : vector<32x1xf32>
    %c0_81 = arith.constant 0 : index
    %c0_82 = arith.constant 0 : index
    %235 = vector.load %arg3[%c0_81, %c0_82] : memref<32x2xf32, #tpu.memory_space<vmem>>, vector<32x1xf32>
    %cst_83 = arith.constant 9.99999974E-6 : f32
    %236 = vector.broadcast %cst_83 : f32 to vector<32x1xf32>
    %237 = arith.addf %234, %236 : vector<32x1xf32>
    %238 = math.rsqrt %237 : vector<32x1xf32>
    %239 = arith.mulf %235, %238 : vector<32x1xf32>
    %240 = vector.broadcast %239 : vector<32x1xf32> to vector<32x128xf32>
    %241 = arith.mulf %229, %240 : vector<32x128xf32>
    %c0_84 = arith.constant 0 : index
    %c1 = arith.constant 1 : index
    %242 = vector.load %arg3[%c0_84, %c1] : memref<32x2xf32, #tpu.memory_space<vmem>>, vector<32x1xf32>
    %243 = vector.broadcast %242 : vector<32x1xf32> to vector<32x128xf32>
    %244 = arith.addf %241, %243 : vector<32x128xf32>
    %cst_85 = arith.constant 0.000000e+00 : f32
    %245 = vector.broadcast %cst_85 : f32 to vector<32x128xf32>
    %246 = arith.maximumf %244, %245 : vector<32x128xf32>
    %c0_86 = arith.constant 0 : index
    %c0_87 = arith.constant 0 : index
    %247 = vector.load %arg5[%c0_86, %c0_87] : memref<32x128xf32, #tpu.memory_space<vmem>>, vector<32x128xf32>
    tpu.vector_store %arg5[%c0_86, %c0_87], %246 {strides = array<i32>} : memref<32x128xf32, #tpu.memory_space<vmem>>, vector<32x128xf32>,
    return
  }
}

</mosaic_0001>

<bundles_post_ra>
// kernel: tpu_custom_call.1
= control target key start
LH: loop header
LB: loop body
LE: loop exit
PB: predicated region body
PF: predicated region fallthrough
CT: control target
= control target key end

     0   :  { %10 = vsyncpa [#allocation3], 0  ;;  %s1499_s0 = inlined_call_operand.vmem [shape: f32[8,128], index: 0, kind: input, shape index: {}]   ;;  %s1500_s1 = inlined_call_operand.vmem [shape: f32[8,8], index: 1, kind: input, shape index: {}]   ;;  %s1501_s2 = inlined_call_operand.hbm [shape: f32[32,392], index: 2, kind: input, shape index: {}]   ;;  %s1502_s3 = inlined_call_operand.vmem [shape: f32[32,2], index: 3, kind: input, shape index: {}]   ;;  %s1503_s4 = inlined_call_operand.vmem [shape: s32[1,128], index: 4, kind: input, shape index: {}]   ;;  %s1504_s5 = inlined_call_operand.hbm [shape: f32[32,128], index: 5, kind: output, shape index: {}]  }
   0x1   :  { %11 = vsyncpa [#allocation4], 0  ;;  %s1245_s18 = smov [#allocation2]   ;;  %s1197_s22 = scalar_lea.hbm %s1501_s2, 2048 }
   0x2   :  { %s21_s19 = sshll.u32 %s1245_s18, 4  ;;  %p1198_p0 = scmp.ne.s32.totalorder %s1501_s2, %s1197_s22  ;;  %s22_s19 = int_to_ptr.vmem [resolvable:$true] %s21_s19 }
   0x3   :  { %p1201_p1 = scmp.lt.u32.totalorder %s1197_s22, %s1501_s2 }
   0x5   :  { %p1203_p2 = pnand %p1201_p1, %p1198_p0 }
   0x7   :  { %1206 = shalt.err (!%p1203_p2)
}
   0x8   :  { %s1207_s27 = scalar_lea.vmem %s22_s19, 2048  ;;  %p1212_p4 = scmp.lt.s32.totalorder %s22_s19, %s22_s19 }
   0x9   :  { %p1208_p3 = scmp.ne.s32.totalorder %s22_s19, %s1207_s27  ;;  %p1213_p5 = scmp.lt.s32.totalorder %s1207_s27, %s1207_s27 }
   0xb   :  { %p1214_p6 = por %p1213_p5, %p1212_p4 }
   0xd   :  { %p1215_p7 = pnand %p1214_p6, %p1208_p3 }
   0xf   :  { %1218 = shalt.err (!%p1215_p7)
}
  0x10   :  { %s1246_s28 = smov 512   ;;  %s1247_s29 = smov 32  }
  0x11   :  { %27 = dma.hbm_to_vmem [thread:$0]  %s1501_s2, 2048, %s22_s19, [#allocation3], %s1246_s28, %s1246_s28, %s1247_s29  }
  0x12   :  { %1241 = dma.done.wait [#allocation3], 2048  }
  0x13   :  { %1242 = vsyncadd [#allocation3], 4294965248  ;;  %v1248_v0 = vmov 0.0   ;;  %vm1249_vm0 = vmmov 0   ;;  %vm42_vm1 = vcmask 64512   ;;  %v35_v1 = vld [vmem:[%s1499_s0] sm:$0xff] }
  0x14   :  { %893 = vmatprep.subr.mxu0 %v1248_v0  ;;  %895 = vmatprep.mubr.msk.f32.mxu0 %vm1249_vm0, %v1248_v0  ;;  %v41_v2 = vld [vmem:[%s1500_s1] sm:$0xff]  ;;  %s1250_s11 = smov 1   ;;  %s1251_s2 = smov 127   ;;  %v126_v10 = vld [vmem:[#allocation2 + $0x18] sm:$0xff]  ;;  %v438_v17 = vld [vmem:[#allocation2 + $0x8] sm:$0xff]  ;;  %vm1288_vm12 = vmmov 1  }
  0x15   :  { %894 = vmatpush3.msra.mxu0 %v35_v1  ;;  %117 = vrot.lane.b32.xlu0 %v35_v1, %s1250_s11  ;;  %v1347_v3 = vld [vmem:[%s1503_s4] ss:$0 sm:$0xff]  ;;  %v127_v11 = vld [vmem:[#allocation2 + $0x38] sm:$0xff]  ;;  %s1252_s0 = smov 3   ;;  %s1253_s1 = smov 19  }
  0x16   :  { %896 = vmatmul.mubr.msk.f32.vlgmr.msra.gmra.mrb[0].mxu0 %vm42_vm1, %v41_v2  ;;  %vm116_vm2 = vcmp.ge.s32.totalorder %v1347_v3, 1  ;;  %vm120_vm3 = vcmp.lt.s32.totalorder %v1347_v3, 63  ;;  %938 = vmatprep.mubr.msk.f32.mxu1 %vm42_vm1, %v126_v10  ;;  %s1254_s4 = smov 17   ;;  %s1255_s14 = smov 18   ;;  %v128_v14 = vld [vmem:[#allocation2 + $0x58] sm:$0xff]  ;;  %v194_v16 = vld [vmem:[#allocation2] sm:$0xff] }
  0x17   :  { %s1256_s15 = smov 2   ;;  %s1257_s16 = smov 14   ;;  %v129_v15 = vld [vmem:[#allocation2 + $0x78] sm:$0xff]  ;;  %930 = vmatprep.mubr.f32.mxu0 %v194_v16  ;;  %vm130_vm4 = vcmp.ge.s32.totalorder %v1347_v3, 19  ;;  %vm134_vm5 = vcmp.ge.s32.totalorder %v1347_v3, 18  ;;  %vm380_vm7 = vcmp.ge.s32.totalorder %v1347_v3, 3  ;;  %vm1057_vm13 = vmpackc.low %vm1288_vm12, %vm116_vm2 }
  0x18   :  { %s1258_s17 = smov 16   ;;  %s1259_s18 = smov 126   ;;  %vm1003_vm6 = vmpackc.low %vm134_vm5, %vm130_vm4  ;;  %vm384_vm8 = vcmp.ge.s32.totalorder %v1347_v3, 2  ;;  %vm138_vm10 = vcmp.ge.s32.totalorder %v1347_v3, 17  ;;  %vm142_vm11 = vcmp.ge.s32.totalorder %v1347_v3, 16  ;;  %vm146_vm15 = vcmp.ge.s32.totalorder %v1347_v3, 15 }
  0x19   :  { %121 = vrot.lane.b32.xlu0 %v35_v1, %s1251_s2  ;;  %s1260_s19 = smov 15   ;;  %s1261_s20 = smov 12   ;;  %vm1051_vm9 = vmpackc.low %vm384_vm8, %vm380_vm7  ;;  %vm150_vm0 = vcmp.ge.s32.totalorder %v1347_v3, 14  ;;  %vm154_vm5 = vcmp.ge.s32.totalorder %v1347_v3, 13  ;;  %vm398_vm8 = vcmp.lt.s32.totalorder %v1347_v3, 61  ;;  %v197_v10 = vld [vmem:[#allocation2 + $0x60] sm:$0xff] }
  0x1a   :  { %s1262_s21 = smov 124   ;;  %s1263_s22 = smov 13   ;;  %vm1009_vm14 = vmpackc.low %vm142_vm11, %vm138_vm10  ;;  %vm162_vm10 = vcmp.ge.s32.totalorder %v1347_v3, 11  ;;  %vm166_vm11 = vcmp.ge.s32.totalorder %v1347_v3, 10  ;;  %v561_v16 = vld [vmem:[#allocation2 + $0x50] sm:$0xff] }
  0x1b   :  { %s1264_s23 = smov 10   ;;  %s1265_s24 = smov 125   ;;  %vm1027_vm12 = vmpackc.low %vm166_vm11, %vm162_vm10  ;;  %vm426_vm10 = vcmp.lt.s32.totalorder %v1347_v3, 54 }
  0x1c   :  { %s1266_s25 = smov 122   ;;  %s1267_s26 = smov 11  }
  0x1d   :  { %s1268_s27 = smov 8   ;;  %s1269_s28 = smov 123  }
  0x1e   :  { %s1270_s29 = smov 120   ;;  %s1271_s30 = smov 9  }
  0x1f   :  { %s1272_s6 = smov 6   ;;  %s1273_s7 = smov 121  }
  0x20   :  { %s1274_s8 = smov 118   ;;  %s1275_s9 = smov 7  }
  0x21   :  { %s1276_s10 = smov 4   ;;  %s1279_s12 = smov 5  }
  0x22   :  { %s1280_s13 = smov 114  }
  0x87   :  { %v118_v4 = vpop.permute.xlu0 %117 }
  0x88   :  { %v119_v5 = vsel %vm116_vm2, %v118_v4, -inf  ;;  %vm394_vm2 = vcmp.lt.s32.totalorder %v1347_v3, 62  ;;  %v196_v4 = vld [vmem:[#allocation2 + $0x40] sm:$0xff] }
  0x89   :  { %v124_v7 = vmax.f32 %v119_v5, %v35_v1  ;;  %vm1063_vm4 = vmpackc.low %vm394_vm2, %vm120_vm3  ;;  %v195_v1 = vld [vmem:[#allocation2 + $0x20] sm:$0xff] }
  0x8b   :  { %v122_v6 = vpop.permute.xlu0 %121 }
  0x8c   :  { %v123_v8 = vsel %vm120_vm3, %v122_v6, -inf  ;;  %v439_v6 = vld [vmem:[#allocation2 + $0x28] sm:$0xff] }
  0x8d   :  { %v125_v9 = vmax.f32 %v124_v7, %v123_v8 }
  0x8f   :  { %936 = vmatprep.subr.mxu1 %v125_v9 }
  0x90   :  { %937 = vmatpush3.msra.mxu1 %v125_v9  ;;  %v440_v9 = vld [vmem:[#allocation2 + $0x48] sm:$0xff] }
  0x91   :  { %939 = vmatmul.mubr.msk.f32.vlgmr.msra.gmra.mrb[0].mxu1 %vm42_vm1, %v127_v11 }
  0x92   :  { %941 = vmatprep.mubr.msk.f32.mxu1 %vm42_vm1, %v128_v14  ;;  %v441_v14 = vld [vmem:[#allocation2 + $0x68] sm:$0xff] }
  0x95   :  { %942 = vmatmul.mubr.msk.f32.gmra.mrb[2].mxu1 %vm42_vm1, %v129_v15  ;;  %vm1015_vm1 = vmpackc.low %vm150_vm0, %vm146_vm15  ;;  %vm170_vm0 = vcmp.ge.s32.totalorder %v1347_v3, 9  ;;  %v559_v15 = vld [vmem:[#allocation2 + $0x10] sm:$0xff] }
  0x96   :  { %976 = vmatprep.mubr.f32.mxu1 %v438_v17 }
  0xe9   :  { %v1357_v12 = vpop.f32.mrb[0].mxu0 }
  0xea   :  { %381 = vrot.lane.b32.xlu0 %v1357_v12, %s1252_s0  ;;  %131 = vrot.lane.b32.xlu1 %v1357_v12, %s1253_s1  ;;  %v897_v13 = vpop.f32.mrb[1].mxu0  ;;  %s1281_s0 = smov 117   ;;  %s1282_s1 = smov 112  }
  0xee   :  { %139 = vrot.lane.b32.xlu0 %v1357_v12, %s1254_s4  ;;  %135 = vrot.lane.b32.xlu1 %v1357_v12, %s1255_s14  ;;  %s1283_s4 = smov 115   ;;  %s1284_s14 = smov 110  }
  0xf2   :  { %388 = vrot.lane.b32.xlu0 %v1357_v12, %s1250_s11  ;;  %385 = vrot.lane.b32.xlu1 %v1357_v12, %s1256_s15  ;;  %s1277_s11 = smov 119   ;;  %s1285_s15 = smov 113  }
  0xf6   :  { %151 = vrot.lane.b32.xlu0 %v1357_v12, %s1257_s16  ;;  %143 = vrot.lane.b32.xlu1 %v1357_v12, %s1258_s17  ;;  %s1286_s16 = smov 111   ;;  %s1287_s17 = smov 109  }
  0xfa   :  { %395 = vrot.lane.b32.xlu0 %v1357_v12, %s1259_s18  ;;  %147 = vrot.lane.b32.xlu1 %v1357_v12, %s1260_s19 }
  0xfe   :  { %159 = vrot.lane.b32.xlu0 %v1357_v12, %s1261_s20  ;;  %391 = vrot.lane.b32.xlu1 %v1357_v12, %s1251_s2  ;;  %s1278_s2 = smov 116  }
 0x102   :  { %403 = vrot.lane.b32.xlu0 %v1357_v12, %s1262_s21  ;;  %155 = vrot.lane.b32.xlu1 %v1357_v12, %s1263_s22 }
 0x106   :  { %167 = vrot.lane.b32.xlu0 %v1357_v12, %s1264_s23  ;;  %399 = vrot.lane.b32.xlu1 %v1357_v12, %s1265_s24 }
 0x10a   :  { %411 = vrot.lane.b32.xlu0 %v1357_v12, %s1266_s25  ;;  %163 = vrot.lane.b32.xlu1 %v1357_v12, %s1267_s26 }
 0x10e   :  { %175 = vrot.lane.b32.xlu0 %v1357_v12, %s1268_s27  ;;  %407 = vrot.lane.b32.xlu1 %v1357_v12, %s1269_s28 }
 0x112   :  { %419 = vrot.lane.b32.xlu0 %v1357_v12, %s1270_s29  ;;  %171 = vrot.lane.b32.xlu1 %v1357_v12, %s1271_s30 }
 0x116   :  { %183 = vrot.lane.b32.xlu0 %v1357_v12, %s1272_s6  ;;  %415 = vrot.lane.b32.xlu1 %v1357_v12, %s1273_s7 }
 0x11a   :  { %427 = vrot.lane.b32.xlu0 %v1357_v12, %s1274_s8  ;;  %179 = vrot.lane.b32.xlu1 %v1357_v12, %s1275_s9 }
 0x11e   :  { %191 = vrot.lane.b32.xlu0 %v1357_v12, %s1276_s10  ;;  %423 = vrot.lane.b32.xlu1 %v1357_v12, %s1277_s11 }
 0x122   :  { %435 = vrot.lane.b32.xlu0 %v1357_v12, %s1278_s2  ;;  %187 = vrot.lane.b32.xlu1 %v1357_v12, %s1279_s12 }
 0x126   :  { %536 = vrot.lane.b32.xlu0 %v1357_v12, %s1280_s13  ;;  %431 = vrot.lane.b32.xlu1 %v1357_v12, %s1281_s0 }
 0x12a   :  { %544 = vrot.lane.b32.xlu0 %v1357_v12, %s1282_s1  ;;  %532 = vrot.lane.b32.xlu1 %v1357_v12, %s1283_s4 }
 0x12e   :  { %552 = vrot.lane.b32.xlu0 %v1357_v12, %s1284_s14  ;;  %540 = vrot.lane.b32.xlu1 %v1357_v12, %s1285_s15 }
 0x132   :  { %548 = vrot.lane.b32.xlu1 %v1357_v12, %s1286_s16 }
 0x136   :  { %556 = vrot.lane.b32.xlu1 %v1357_v12, %s1287_s17 }
 0x15c   :  { %v382_v18 = vpop.permute.xlu0 %381  ;;  %v132_v19 = vpop.permute.xlu1 %131 }
 0x160   :  { %v140_v20 = vpop.permute.xlu0 %139  ;;  %v136_v21 = vpop.permute.xlu1 %135 }
 0x161   :  { %v1002_v22 = vpack.c.bf16 %v136_v21, %v132_v19  ;;  %v560_v21 = vld [vmem:[#allocation2 + $0x30] sm:$0xff] }
 0x163   :  { %1004 = vmatprep.subr.msk.bf16.mxu0 %vm1003_vm6, %v1002_v22 }
 0x164   :  { %v389_v23 = vpop.permute.xlu0 %388  ;;  %1007 = vmatpush3.bf16.msk.msra.mxu0 %vm1003_vm6, %v1002_v22  ;;  %v386_v24 = vpop.permute.xlu1 %385  ;;  %vm158_vm6 = vcmp.ge.s32.totalorder %v1347_v3, 12  ;;  %v562_v22 = vld [vmem:[#allocation2 + $0x70] sm:$0xff] }
 0x165   :  { %v1050_v25 = vpack.c.bf16 %v386_v24, %v382_v18  ;;  %v1056_v26 = vpack.c.bf16 %v1357_v12, %v389_v23  ;;  %vm1021_vm7 = vmpackc.low %vm158_vm6, %vm154_vm5  ;;  %vm418_vm5 = vcmp.lt.s32.totalorder %v1347_v3, 56 }
 0x167   :  { %1052 = vmatprep.subr.msk.bf16.mxu1 %vm1051_vm9, %v1050_v25 }
 0x168   :  { %v152_v27 = vpop.permute.xlu0 %151  ;;  %1055 = vmatpush3.bf16.msk.msra.mxu1 %vm1051_vm9, %v1050_v25  ;;  %v144_v28 = vpop.permute.xlu1 %143  ;;  %vm402_vm9 = vcmp.lt.s32.totalorder %v1347_v3, 60 }
 0x169   :  { %v1008_v29 = vpack.c.bf16 %v144_v28, %v140_v20  ;;  %1058 = vmatprep.subr.msk.bf16.mxu1 %vm1057_vm13, %v1056_v26  ;;  %vm1069_vm3 = vmpackc.low %vm402_vm9, %vm398_vm8  ;;  %vm182_vm8 = vcmp.ge.s32.totalorder %v1347_v3, 6 }
 0x16b   :  { %1010 = vmatprep.subr.msk.bf16.mxu0 %vm1009_vm14, %v1008_v29 }
 0x16c   :  { %v396_v30 = vpop.permute.xlu0 %395  ;;  %1013 = vmatpush3.bf16.msk.msra.mxu0 %vm1009_vm14, %v1008_v29  ;;  %1061 = vmatpush3.bf16.msk.msra.mxu1 %vm1057_vm13, %v1056_v26  ;;  %v148_v31 = vpop.permute.xlu1 %147  ;;  %vm406_vm13 = vcmp.lt.s32.totalorder %v1347_v3, 59  ;;  %vm410_vm14 = vcmp.lt.s32.totalorder %v1347_v3, 58 }
 0x16d   :  { %v1014_v32 = vpack.c.bf16 %v152_v27, %v148_v31  ;;  %vm1075_vm15 = vmpackc.low %vm410_vm14, %vm406_vm13  ;;  %vm190_vm13 = vcmp.ge.s32.totalorder %v1347_v3, 4 }
 0x16f   :  { %1016 = vmatprep.subr.msk.bf16.mxu0 %vm1015_vm1, %v1014_v32 }
 0x170   :  { %v160_v33 = vpop.permute.xlu0 %159  ;;  %1019 = vmatpush3.bf16.msk.msra.mxu0 %vm1015_vm1, %v1014_v32  ;;  %v392_v34 = vpop.permute.xlu1 %391  ;;  %vm174_vm1 = vcmp.ge.s32.totalorder %v1347_v3, 8 }
 0x171   :  { %v1062_v35 = vpack.c.bf16 %v396_v30, %v392_v34  ;;  %vm1033_vm2 = vmpackc.low %vm174_vm1, %vm170_vm0  ;;  %vm434_vm0 = vcmp.lt.s32.totalorder %v1347_v3, 52 }
 0x173   :  { %1064 = vmatprep.subr.msk.bf16.mxu1 %vm1063_vm4, %v1062_v35 }
 0x174   :  { %v404_v36 = vpop.permute.xlu0 %403  ;;  %1067 = vmatpush3.bf16.msk.msra.mxu1 %vm1063_vm4, %v1062_v35  ;;  %v156_v37 = vpop.permute.xlu1 %155  ;;  %vm414_vm4 = vcmp.lt.s32.totalorder %v1347_v3, 57 }
 0x175   :  { %v1020_v38 = vpack.c.bf16 %v160_v33, %v156_v37  ;;  %vm1081_vm6 = vmpackc.low %vm418_vm5, %vm414_vm4  ;;  %vm535_vm4 = vcmp.lt.s32.totalorder %v1347_v3, 50 }
 0x177   :  { %1022 = vmatprep.subr.msk.bf16.mxu0 %vm1021_vm7, %v1020_v38 }
 0x178   :  { %v168_v39 = vpop.permute.xlu0 %167  ;;  %1025 = vmatpush3.bf16.msk.msra.mxu0 %vm1021_vm7, %v1020_v38  ;;  %v400_v40 = vpop.permute.xlu1 %399  ;;  %vm178_vm7 = vcmp.ge.s32.totalorder %v1347_v3, 7 }
 0x179   :  { %v1068_v41 = vpack.c.bf16 %v404_v36, %v400_v40  ;;  %vm1039_vm9 = vmpackc.low %vm182_vm8, %vm178_vm7  ;;  %vm543_vm7 = vcmp.lt.s32.totalorder %v1347_v3, 48 }
 0x17b   :  { %1070 = vmatprep.subr.msk.bf16.mxu1 %vm1069_vm3, %v1068_v41 }
 0x17c   :  { %v412_v42 = vpop.permute.xlu0 %411  ;;  %1073 = vmatpush3.bf16.msk.msra.mxu1 %vm1069_vm3, %v1068_v41  ;;  %v164_v43 = vpop.permute.xlu1 %163  ;;  %vm422_vm3 = vcmp.lt.s32.totalorder %v1347_v3, 55 }
 0x17d   :  { %v1026_v44 = vpack.c.bf16 %v168_v39, %v164_v43  ;;  %vm1087_vm11 = vmpackc.low %vm426_vm10, %vm422_vm3  ;;  %vm551_vm3 = vcmp.lt.s32.totalorder %v1347_v3, 46  ;;  %vm563_vm10 = vcmask 457728  }
 0x17f   :  { %1028 = vmatprep.subr.msk.bf16.mxu0 %vm1027_vm12, %v1026_v44 }
 0x180   :  { %v176_v45 = vpop.permute.xlu0 %175  ;;  %1031 = vmatpush3.bf16.msk.msra.mxu0 %vm1027_vm12, %v1026_v44  ;;  %v408_v46 = vpop.permute.xlu1 %407  ;;  %vm186_vm12 = vcmp.ge.s32.totalorder %v1347_v3, 5 }
 0x181   :  { %v1074_v47 = vpack.c.bf16 %v412_v42, %v408_v46  ;;  %vm1045_vm14 = vmpackc.low %vm190_vm13, %vm186_vm12  ;;  %vm555_vm12 = vcmp.lt.s32.totalorder %v1347_v3, 45 }
 0x183   :  { %1076 = vmatprep.subr.msk.bf16.mxu1 %vm1075_vm15, %v1074_v47 }
 0x184   :  { %v420_v48 = vpop.permute.xlu0 %419  ;;  %1079 = vmatpush3.bf16.msk.msra.mxu1 %vm1075_vm15, %v1074_v47  ;;  %v172_v49 = vpop.permute.xlu1 %171  ;;  %vm430_vm15 = vcmp.lt.s32.totalorder %v1347_v3, 53 }
 0x185   :  { %v1032_v50 = vpack.c.bf16 %v176_v45, %v172_v49  ;;  %vm1093_vm1 = vmpackc.low %vm434_vm0, %vm430_vm15 }
 0x187   :  { %1034 = vmatprep.subr.msk.bf16.mxu0 %vm1033_vm2, %v1032_v50 }
 0x188   :  { %v184_v51 = vpop.permute.xlu0 %183  ;;  %1037 = vmatpush3.bf16.msk.msra.mxu0 %vm1033_vm2, %v1032_v50  ;;  %v416_v52 = vpop.permute.xlu1 %415  ;;  %vm531_vm2 = vcmp.lt.s32.totalorder %v1347_v3, 51 }
 0x189   :  { %v1080_v53 = vpack.c.bf16 %v420_v48, %v416_v52  ;;  %vm1099_vm5 = vmpackc.low %vm535_vm4, %vm531_vm2 }
 0x18b   :  { %1082 = vmatprep.subr.msk.bf16.mxu1 %vm1081_vm6, %v1080_v53 }
 0x18c   :  { %v428_v54 = vpop.permute.xlu0 %427  ;;  %1085 = vmatpush3.bf16.msk.msra.mxu1 %vm1081_vm6, %v1080_v53  ;;  %v180_v55 = vpop.permute.xlu1 %179  ;;  %vm539_vm6 = vcmp.lt.s32.totalorder %v1347_v3, 49 }
 0x18d   :  { %v1038_v56 = vpack.c.bf16 %v184_v51, %v180_v55  ;;  %vm1440_vm8 = vmpackc.low %vm543_vm7, %vm539_vm6  ;;  %v698_v55 = vld [vmem:[%s1502_s3] sm:$0xff] }
 0x18f   :  { %1040 = vmatprep.subr.msk.bf16.mxu0 %vm1039_vm9, %v1038_v56 }
 0x190   :  { %v192_v57 = vpop.permute.xlu0 %191  ;;  %1043 = vmatpush3.bf16.msk.msra.mxu0 %vm1039_vm9, %v1038_v56  ;;  %v424_v58 = vpop.permute.xlu1 %423  ;;  %vm547_vm9 = vcmp.lt.s32.totalorder %v1347_v3, 47  ;;  %v699_v56 = vld [vmem:[%s1502_s3 + $0x8] sm:$0xff] }
 0x191   :  { %v1086_v59 = vpack.c.bf16 %v428_v54, %v424_v58  ;;  %v1289_v54 = vmov 1   ;;  %v1290_v58 = vmov 0  }
 0x192   :  { %1185 = vset.pattern.permute.xlu1 %v1289_v54  ;;  %1184 = vset.pattern.permute.xlu0 %v1290_v58 }
 0x193   :  { %1088 = vmatprep.subr.msk.bf16.mxu1 %vm1087_vm11, %v1086_v59 }
 0x194   :  { %v436_v60 = vpop.permute.xlu0 %435  ;;  %1091 = vmatpush3.bf16.msk.msra.mxu1 %vm1087_vm11, %v1086_v59  ;;  %v188_v61 = vpop.permute.xlu1 %187  ;;  %vm1111_vm11 = vmpackc.low %vm551_vm3, %vm547_vm9 }
 0x195   :  { %v1044_v62 = vpack.c.bf16 %v192_v57, %v188_v61  ;;  %v700_v57 = vld [vmem:[%s1502_s3 + $0x10] sm:$0xff] }
 0x197   :  { %1046 = vmatprep.subr.msk.bf16.mxu0 %vm1045_vm14, %v1044_v62 }
 0x198   :  { %v537_v63 = vpop.permute.xlu0 %536  ;;  %1049 = vmatpush3.bf16.msk.msra.mxu0 %vm1045_vm14, %v1044_v62  ;;  %v432_v0 = vpop.permute.xlu1 %431 }
 0x199   :  { %v1092_v2 = vpack.c.bf16 %v436_v60, %v432_v0 }
 0x19b   :  { %1094 = vmatprep.subr.msk.bf16.mxu1 %vm1093_vm1, %v1092_v2  ;;  %931 = vmatmul.mubr.f32.vlgmr.msra.gmra.mrb[2].mxu0 %v195_v1 }
 0x19c   :  { %1097 = vmatpush3.bf16.msk.msra.mxu1 %vm1093_vm1, %v1092_v2  ;;  %v533_v5 = vpop.permute.xlu1 %532  ;;  %933 = vmatprep.mubr.f32.mxu0 %v196_v4  ;;  %v545_v8 = vpop.permute.xlu0 %544 }
 0x19d   :  { %v1098_v7 = vpack.c.bf16 %v537_v63, %v533_v5 }
 0x19f   :  { %977 = vmatmul.mubr.f32.vlgmr.msra.gmra.mrb[0].mxu1 %v439_v6  ;;  %1100 = vmatprep.subr.msk.bf16.mxu0 %vm1099_vm5, %v1098_v7 }
 0x1a0   :  { %1116 = vmatprep.subr.msk.bf16.mxu1 %vm1099_vm5, %v1098_v7  ;;  %1103 = vmatpush3.bf16.msk.msra.mxu0 %vm1099_vm5, %v1098_v7  ;;  %v541_v11 = vpop.permute.xlu1 %540  ;;  %v553_v17 = vpop.permute.xlu0 %552 }
 0x1a1   :  { %1120 = vmatpush3.bf16.msk.msra.mxu1 %vm1099_vm5, %v1098_v7  ;;  %v1104_v13 = vpack.c.bf16 %v545_v8, %v541_v11  ;;  %979 = vmatprep.mubr.f32.mxu1 %v440_v9 }
 0x1a2   :  { %934 = vmatmul.mubr.f32.gmra.mrb[4].mxu0 %v197_v10  ;;  %v701_v10 = vld [vmem:[%s1502_s3 + $0x18] sm:$0xff]  ;;  %s1291_s3 = smov [#allocation5]  }
 0x1a3   :  { %1106 = vmatprep.subr.msk.bf16.mxu0 %vm1440_vm8, %v1104_v13  ;;  %1117 = vmatprep.subr.msk.bf16.mxu1 %vm1440_vm8, %v1104_v13  ;;  %s775_s26 = sshll.u32 %s1291_s3, 4  ;;  %s776_s26 = int_to_ptr.vmem [resolvable:$true] %s775_s26 }
 0x1a4   :  { %1109 = vmatpush3.bf16.msk.msra.mxu0 %vm1440_vm8, %v1104_v13  ;;  %v549_v18 = vpop.permute.xlu1 %548  ;;  %980 = vmatmul.mubr.f32.gmra.mrb[2].mxu1 %v441_v14  ;;  %s1219_s28 = scalar_lea.vmem %s776_s26, 512  ;;  %p1224_p9 = scmp.lt.s32.totalorder %s776_s26, %s776_s26 }
 0x1a5   :  { %1121 = vmatpush3.bf16.msk.msra.mxu1 %vm1440_vm8, %v1104_v13  ;;  %v1110_v19 = vpack.c.bf16 %v553_v17, %v549_v18  ;;  %996 = vmatprep.mubr.msk.f32.mxu0 %vm563_vm10, %v559_v15  ;;  %p1220_p8 = scmp.ne.s32.totalorder %s776_s26, %s1219_s28  ;;  %p1225_p10 = scmp.lt.s32.totalorder %s1219_s28, %s1219_s28 }
 0x1a6   :  { %999 = vmatprep.mubr.msk.f32.mxu1 %vm563_vm10, %v561_v16 }
 0x1a7   :  { %1112 = vmatprep.subr.msk.bf16.mxu0 %vm1111_vm11, %v1110_v19  ;;  %1118 = vmatprep.subr.msk.bf16.mxu1 %vm1111_vm11, %v1110_v19  ;;  %p1226_p11 = por %p1225_p10, %p1224_p9 }
 0x1a8   :  { %1115 = vmatpush3.bf16.msk.msra.mxu0 %vm1111_vm11, %v1110_v19  ;;  %v557_v20 = vpop.permute.xlu1 %556 }
 0x1a9   :  { %1122 = vmatpush3.bf16.msk.msra.mxu1 %vm1111_vm11, %v1110_v19  ;;  %994 = vmatprep.subr.msk.mxu0 %vm555_vm12, %v557_v20  ;;  %p1227_p12 = pnand %p1226_p11, %p1220_p8 }
 0x1aa   :  { %1119 = vmatprep.subr.msk.mxu1 %vm555_vm12, %v557_v20 }
 0x1ac   :  { %995 = vmatpush3.msk.msra.mxu0 %vm555_vm12, %v557_v20 }
 0x1ad   :  { %1123 = vmatpush3.msk.msra.mxu1 %vm555_vm12, %v557_v20  ;;  %997 = vmatmul.mubr.msk.f32.vlgmr.msra.gmra.mrb[6].mxu0 %vm563_vm10, %v560_v21 }
 0x1ae   :  { %1000 = vmatmul.mubr.msk.f32.vlgmr.msra.gmra.mrb[2].mxu1 %vm563_vm10, %v562_v22 }
 0x26e   :  { %v932_v23 = vpop.f32.mrb[2].mxu0 }
 0x26f   :  { %v264_v24 = vpop.f32.mrb[3].mxu0 }
 0x272   :  { %v978_v3 = vpop.f32.mrb[0].mxu1 }
 0x273   :  { %v1124_v25 = vadd.f32 %v978_v3, %v932_v23  ;;  %v508_v26 = vpop.f32.mrb[1].mxu1 }
 0x274   :  { %v1126_v27 = vadd.f32 %v508_v26, %v264_v24 }
 0x275   :  { %v935_v28 = vpop.f32.mrb[4].mxu0 }
 0x276   :  { %v274_v29 = vpop.f32.mrb[5].mxu0 }
 0x280   :  { %v998_v30 = vpop.f32.mrb[6].mxu0 }
 0x281   :  { %v1125_v31 = vadd.f32 %v1124_v25, %v998_v30  ;;  %v1001_v32 = vpop.f32.mrb[2].mxu1  ;;  %v642_v33 = vpop.f32.mrb[7].mxu0 }
 0x282   :  { %v1128_v34 = vadd.f32 %v1001_v32, %v935_v28  ;;  %v1127_v35 = vadd.f32 %v1126_v27, %v642_v33  ;;  %v652_v36 = vpop.f32.mrb[3].mxu1 }
 0x283   :  { %v1129_v37 = vadd.f32 %v652_v36, %v274_v29  ;;  %667 = vadd.xlane.f32.xlu1 %v1125_v31 }
 0x284   :  { %665 = vadd.xlane.f32.xlu0 %v1127_v35 }
 0x288   :  { %669 = vadd.xlane.f32.xlu0 %v1129_v37 }
 0x28c   :  { %671 = vadd.xlane.f32.xlu0 %v1128_v34 }
 0x310   :  { %v668_v38 = vpop.xlane.xlu1 %667 }
 0x311   :  { %v675_v39 = vmul.f32 0.0078125, %v668_v38  ;;  %v666_v40 = vpop.xlane.xlu0 %665 }
 0x312   :  { %v674_v41 = vmul.f32 0.0078125, %v666_v40 }
 0x313   :  { %v679_v42 = vsub.f32 %v1125_v31, %v675_v39 }
 0x314   :  { %v1459_v43 = vsub.f32 %v1127_v35, %v674_v41 }
 0x315   :  { %v670_v44 = vpop.xlane.xlu0 %669  ;;  %v683_v45 = vmul.f32 %v679_v42, %v679_v42 }
 0x316   :  { %v676_v46 = vmul.f32 0.0078125, %v670_v44  ;;  %v682_v47 = vmul.f32 %v1459_v43, %v1459_v43 }
 0x317   :  { %688 = vadd.xlane.f32.xlu0 %v683_v45 }
 0x318   :  { %v1463_v48 = vsub.f32 %v1129_v37, %v676_v46  ;;  %686 = vadd.xlane.f32.xlu1 %v682_v47 }
 0x319   :  { %v672_v49 = vpop.xlane.xlu0 %671 }
 0x31a   :  { %v677_v50 = vmul.f32 0.0078125, %v672_v49  ;;  %v684_v51 = vmul.f32 %v1463_v48, %v1463_v48 }
 0x31c   :  { %v1467_v52 = vsub.f32 %v1128_v34, %v677_v50  ;;  %690 = vadd.xlane.f32.xlu1 %v684_v51 }
 0x31e   :  { %v685_v53 = vmul.f32 %v1467_v52, %v1467_v52 }
 0x320   :  { %692 = vadd.xlane.f32.xlu0 %v685_v53 }
 0x32d   :  { %740 = vperm.xlu1 %1185, %v698_v55  }
 0x331   :  { %745 = vperm.xlu1 %1185, %v699_v56  }
 0x335   :  { %750 = vperm.xlu1 %1185, %v700_v57  }
 0x339   :  { %1186 = vset.pattern.permute.xlu1 %v1290_v58 }
 0x3a4   :  { %v689_v59 = vpop.xlane.xlu0 %688 }
 0x3a5   :  { %v695_v60 = vmul.f32 0.0078125, %v689_v59  ;;  %v687_v62 = vpop.xlane.xlu1 %686 }
 0x3a6   :  { %v694_v63 = vmul.f32 0.0078125, %v687_v62 }
 0x3a7   :  { %v703_v61 = vadd.f32 1e-05, %v695_v60 }
 0x3a8   :  { %v702_v4 = vadd.f32 1e-05, %v694_v63 }
 0x3a9   :  { %1189 = vrsqrt.f32 %v703_v61  ;;  %v691_v0 = vpop.xlane.xlu1 %690 }
 0x3aa   :  { %v696_v5 = vmul.f32 0.0078125, %v691_v0 }
 0x3ac   :  { %v704_v8 = vadd.f32 1e-05, %v696_v5 }
 0x3ad   :  { %v693_v1 = vpop.xlane.xlu0 %692  ;;  %v741_v17 = vpop.permute.xlu1 %740 }
 0x3ae   :  { %v697_v2 = vmul.f32 0.0078125, %v693_v1 }
 0x3b0   :  { %v705_v6 = vadd.f32 1e-05, %v697_v2 }
 0x3b1   :  { %v746_v18 = vpop.permute.xlu1 %745 }
 0x3b2   :  { %1191 = vrsqrt.f32 %v705_v6 }
 0x3b3   :  { %v1190_v7 = vpop.eup %1189  ;;  %1193 = vrsqrt.f32 %v702_v4 }
 0x3b4   :  { %v711_v9 = vmul.f32 %v1190_v7, %v699_v56  ;;  %1195 = vrsqrt.f32 %v704_v8 }
 0x3b5   :  { %v751_v22 = vpop.permute.xlu1 %750 }
 0x3b6   :  { %721 = vperm.xlu0 %1184, %v711_v9  }
 0x3ba   :  { %1188 = vset.pattern.permute.xlu0 %v1289_v54 }
 0x3bc   :  { %v1192_v11 = vpop.eup %1191 }
 0x3bd   :  { %v713_v12 = vmul.f32 %v1192_v11, %v701_v10  ;;  %v1194_v13 = vpop.eup %1193 }
 0x3be   :  { %v710_v14 = vmul.f32 %v1194_v13, %v698_v55  ;;  %v1196_v15 = vpop.eup %1195 }
 0x3bf   :  { %731 = vperm.xlu1 %1186, %v713_v12   ;;  %v712_v16 = vmul.f32 %v1196_v15, %v700_v57 }
 0x3c3   :  { %716 = vperm.xlu1 %1186, %v710_v14  }
 0x3c7   :  { %726 = vperm.xlu1 %1186, %v712_v16  }
 0x3cb   :  { %1187 = vset.pattern.permute.xlu1 %v1289_v54 }
 0x3cc   :  { %755 = vperm.xlu1 %1187, %v701_v10  }
 0x435   :  { %v722_v19 = vpop.permute.xlu0 %721 }
 0x436   :  { %v735_v20 = vmul.f32 %v722_v19, %v679_v42 }
 0x438   :  { %v759_v21 = vadd.f32 %v746_v18, %v735_v20 }
 0x43a   :  { %v763_v23 = vmax.f32 %v759_v21, 0.0 }
 0x43c   :  { %767 = vst [vmem:[#allocation5 + $0x8] sm:$0xff] %v763_v23 }
 0x43e   :  { %v732_v24 = vpop.permute.xlu1 %731 }
 0x43f   :  { %v737_v31 = vmul.f32 %v732_v24, %v1467_v52 }
 0x442   :  { %v717_v3 = vpop.permute.xlu1 %716 }
 0x443   :  { %v734_v25 = vmul.f32 %v717_v3, %v1459_v43 }
 0x445   :  { %v758_v26 = vadd.f32 %v741_v17, %v734_v25 }
 0x446   :  { %v727_v27 = vpop.permute.xlu1 %726 }
 0x447   :  { %v762_v28 = vmax.f32 %v758_v26, 0.0  ;;  %v736_v29 = vmul.f32 %v727_v27, %v1463_v48 }
 0x449   :  { %766 = vst [vmem:[#allocation5] sm:$0xff] %v762_v28  ;;  %v760_v30 = vadd.f32 %v751_v22, %v736_v29 }
 0x44b   :  { %v764_v32 = vmax.f32 %v760_v30, 0.0  ;;  %v756_v33 = vpop.permute.xlu1 %755 }
 0x44c   :  { %v761_v34 = vadd.f32 %v756_v33, %v737_v31 }
 0x44d   :  { %768 = vst [vmem:[#allocation5 + $0x10] sm:$0xff] %v764_v32 }
 0x44e   :  { %v765_v35 = vmax.f32 %v761_v34, 0.0 }
 0x450   :  { %769 = vst [vmem:[#allocation5 + $0x18] sm:$0xff] %v765_v35 }
 0x451   :  { %1230 = shalt.err (!%p1227_p12)
}
 0x452   :  { %s1231_s6 = scalar_lea.hbm %s1504_s5, 512 }
 0x453   :  { %p1232_p13 = scmp.ne.s32.totalorder %s1504_s5, %s1231_s6  ;;  %p1235_p0 = scmp.lt.u32.totalorder %s1231_s6, %s1504_s5 }
 0x455   :  { %p1237_p1 = pnand %p1235_p0, %p1232_p13 }
 0x457   :  { %1240 = shalt.err (!%p1237_p1)
}
 0x458   :  { %s1292_s11 = smov 128  }
 0x459   :  { %781 = dma.vmem_to_hbm [thread:$0]  %s776_s26, 512, %s1504_s5, [#allocation4], %s1292_s11, %s1292_s11, %s1268_s27  }
 0x45a   :  { %1243 = dma.done.wait [#allocation4], 512  }
 0x45b   :  { %1244 = vsyncadd [#allocation4], 4294966784 }
 0x45c   :  { %785 = vsyncpa [#allocation3], 1 }
 0x45d   :  { %786 = vsyncpa [#allocation4], 1 }

</bundles_post_ra>
